<compile_context>
chip_gen: v6e
topology: v6e:2x2x1
jax: 0.10.0
libtpu: 0.0.40
codegen_flags: <defaults>
</compile_context>

<pallas_src>
import functools
import math

import jax
import jax.numpy as jnp
from jax import lax
from jax.experimental import pallas as pl
from jax.experimental.pallas import tpu as pltpu


def dpnn6_kernel(key_ref, value_ref, query_ref,
                 wk_ref, bk_ref, wq_ref, bq_ref, wv_ref, bv_ref,
                 wo_ref, bo_ref,
                 out_ref, *, compute_dtype=jnp.float32):
    B, Lk, Dk = key_ref.shape
    _, _, Dv = value_ref.shape
    _, Lq, Dq = query_ref.shape
    H = wk_ref.shape[1]

    # ---- Input projections on flattened (B*L, D) matrices (fills MXU rows). ----
    key = key_ref[...].reshape(B * Lk, Dk).astype(compute_dtype)
    val = value_ref[...].reshape(B * Lk, Dv).astype(compute_dtype)
    qry = query_ref[...].reshape(B * Lq, Dq).astype(compute_dtype)

    wk = (jnp.dot(key, wk_ref[...].astype(compute_dtype),
                  preferred_element_type=jnp.float32) + bk_ref[...]).reshape(B, Lk, H)
    wq = (jnp.dot(qry, wq_ref[...].astype(compute_dtype),
                  preferred_element_type=jnp.float32) + bq_ref[...]).reshape(B, Lq, H)
    wv = (jnp.dot(val, wv_ref[...].astype(compute_dtype),
                  preferred_element_type=jnp.float32) + bv_ref[...]).reshape(B, Lk, H)

    inv_sqrt_d = 1.0 / math.sqrt(H)

    # dist[b,i,k] = sum_j wk[b,i,j] * wq[b,k,j]   (contract last-vs-last, batch over b)
    dist = lax.dot_general(
        wk.astype(compute_dtype), wq.astype(compute_dtype),
        dimension_numbers=(((2,), (2,)), ((0,), (0,))),
        preferred_element_type=jnp.float32) * inv_sqrt_d          # (B, Lk, Lq), f32

    # Softmax over the last (Lq) axis — kept in f32.
    dist = dist - jnp.max(dist, axis=-1, keepdims=True)
    e = jnp.exp(dist)
    weights = e * pl.reciprocal(jnp.sum(e, axis=-1, keepdims=True), approx=True)

    # context[b,k,j] = sum_i weights[b,i,k] * wv[b,i,j]   (contract over Lk, batch over b)
    context = lax.dot_general(
        weights.astype(compute_dtype), wv.astype(compute_dtype),
        dimension_numbers=(((1,), (1,)), ((0,), (0,))),
        preferred_element_type=jnp.float32)                       # (B, Lq, H), f32

    # Final linear on the flattened (B*Lq, H) matrix.
    ctx_flat = context.reshape(B * Lq, H).astype(compute_dtype)
    res = jnp.dot(ctx_flat, wo_ref[...].astype(compute_dtype),
                  preferred_element_type=jnp.float32) + bo_ref[...]
    out_ref[...] = res.astype(out_ref.dtype)                      # (B*Lq, Dv)


def dpnn6_forward(KEY, VALUE, QUERY, params, *, compute_dtype=jnp.float32):
    """params: dict of (already transposed) weights wk,wq,wv,wo with shapes
    (Dk,H),(Dq,H),(Dv,H),(H,Dv) and biases bk,bq,bv,bo with shapes (1,H)x3,(1,Dv)."""
    B, Lk, Dk = KEY.shape
    _, _, Dv = VALUE.shape
    _, Lq, Dq = QUERY.shape
    H = params["wk"].shape[1]

    # Advisory cost hint for the XLA scheduler.
    flops = 2 * B * (Lk * Dk * H + Lq * Dq * H + Lk * Dv * H
                     + 2 * Lk * Lq * H + Lq * H * Dv)
    transcendentals = B * Lk * Lq
    bytes_accessed = 4 * (B * Lk * Dk + B * Lk * Dv + B * Lq * Dq
                          + Dk * H + Dq * H + Dv * H + H * Dv
                          + 3 * H + Dv + B * Lq * Dv)
    cost = pl.CostEstimate(flops=flops, transcendentals=transcendentals,
                           bytes_accessed=bytes_accessed)

    vmem = lambda: pl.BlockSpec(memory_space=pltpu.MemorySpace.VMEM)

    out_flat = pl.pallas_call(
        functools.partial(dpnn6_kernel, compute_dtype=compute_dtype),
        out_shape=jax.ShapeDtypeStruct((B * Lq, Dv), jnp.float32),
        in_specs=[vmem() for _ in range(11)],
        out_specs=vmem(),
        cost_estimate=cost,
    )(KEY, VALUE, QUERY,
      params["wk"], params["bk"],
      params["wq"], params["bq"],
      params["wv"], params["bv"],
      params["wo"], params["bo"])

    return out_flat.reshape(B, Lq, Dv)   # free, contiguous reshape in the wrapper


def dpnn6_reference(KEY, VALUE, QUERY, params):
    """Pure-JAX reference (dropout = identity), mirroring the PyTorch forward."""
    wk = KEY @ params["wk"] + params["bk"]
    wq = QUERY @ params["wq"] + params["bq"]
    wv = VALUE @ params["wv"] + params["bv"]
    d = wq.shape[-1]
    dist = jnp.einsum('bij,bkj->bik', wk, wq) / math.sqrt(d)
    weights = jax.nn.softmax(dist, axis=2)
    context = jnp.einsum('bik,bij->bkj', weights, wv)
    return context @ params["wo"] + params["bo"]


def init_params(key, input_k, input_q, input_v, hidden_size):
    ks = jax.random.split(key, 8)
    def lin(kw, kb, din, dout):
        bound = 1.0 / math.sqrt(din)
        w = jax.random.uniform(kw, (din, dout), jnp.float32, -bound, bound)
        b = jax.random.uniform(kb, (1, dout), jnp.float32, -bound, bound)
        return w, b
    wk, bk = lin(ks[0], ks[1], input_k, hidden_size)
    wq, bq = lin(ks[2], ks[3], input_q, hidden_size)
    wv, bv = lin(ks[4], ks[5], input_v, hidden_size)
    wo, bo = lin(ks[6], ks[7], hidden_size, input_v)
    return dict(wk=wk, bk=bk, wq=wq, bq=bq, wv=wv, bv=bv, wo=wo, bo=bo)


if __name__ == "__main__":
    B, Lk, Lq = 2, 8, 8
    input_k, input_q, input_v, hidden = 4, 4, 4, 32

    root = jax.random.PRNGKey(0)
    kp, kk, kv_, kq = jax.random.split(root, 4)
    params = init_params(kp, input_k, input_q, input_v, hidden)

    KEY = jax.random.normal(kk, (B, Lk, input_k), jnp.float32)
    VALUE = jax.random.normal(kv_, (B, Lk, input_v), jnp.float32)
    QUERY = jax.random.normal(kq, (B, Lq, input_q), jnp.float32)

    out = dpnn6_forward(KEY, VALUE, QUERY, params)
    out = jax.block_until_ready(out)

    ref = dpnn6_reference(KEY, VALUE, QUERY, params)
    assert out.shape == (B, Lq, input_v)
    # Tolerance loosened slightly for the EUP approx-reciprocal softmax denominator.
    assert jnp.allclose(out, ref, atol=2e-3, rtol=2e-3), "mismatch vs pure-JAX reference"

    print("KERNEL_OK")
</pallas_src>

<mosaic_0001>
module attributes {stable_mosaic.version = 11 : i64} {
  func.func @dpnn6_kernel(%arg0: memref<2x8x4xf32, #tpu.memory_space<vmem>>, %arg1: memref<2x8x4xf32, #tpu.memory_space<vmem>>, %arg2: memref<2x8x4xf32, #tpu.memory_space<vmem>>, %arg3: memref<4x32xf32, #tpu.memory_space<vmem>>, %arg4: memref<1x32xf32, #tpu.memory_space<vmem>>, %arg5: memref<4x32xf32, #tpu.memory_space<vmem>>, %arg6: memref<1x32xf32, #tpu.memory_space<vmem>>, %arg7: memref<4x32xf32, #tpu.memory_space<vmem>>, %arg8: memref<1x32xf32, #tpu.memory_space<vmem>>, %arg9: memref<32x4xf32, #tpu.memory_space<vmem>>, %arg10: memref<1x4xf32, #tpu.memory_space<vmem>>, %arg11: memref<16x4xf32, #tpu.memory_space<vmem>>) attributes {dimension_semantics = [], scalar_prefetch = 0 : i64, scratch_operands = 0 : i64, tpu.core_type = #tpu.core_type<tc>} {
    %c0 = arith.constant 0 : index
    %c0_0 = arith.constant 0 : index
    %c0_1 = arith.constant 0 : index
    %0 = vector.load %arg0[%c0, %c0_0, %c0_1] : memref<2x8x4xf32, #tpu.memory_space<vmem>>, vector<2x8x4xf32>
    %1 = vector.shape_cast %0 : vector<2x8x4xf32> to vector<16x4xf32>
    %c0_2 = arith.constant 0 : index
    %c0_3 = arith.constant 0 : index
    %c0_4 = arith.constant 0 : index
    %2 = vector.load %arg1[%c0_2, %c0_3, %c0_4] : memref<2x8x4xf32, #tpu.memory_space<vmem>>, vector<2x8x4xf32>
    %3 = vector.shape_cast %2 : vector<2x8x4xf32> to vector<16x4xf32>
    %c0_5 = arith.constant 0 : index
    %c0_6 = arith.constant 0 : index
    %c0_7 = arith.constant 0 : index
    %4 = vector.load %arg2[%c0_5, %c0_6, %c0_7] : memref<2x8x4xf32, #tpu.memory_space<vmem>>, vector<2x8x4xf32>
    %5 = vector.shape_cast %4 : vector<2x8x4xf32> to vector<16x4xf32>
    %c0_8 = arith.constant 0 : index
    %c0_9 = arith.constant 0 : index
    %6 = vector.load %arg3[%c0_8, %c0_9] : memref<4x32xf32, #tpu.memory_space<vmem>>, vector<4x32xf32>
    %cst = arith.constant dense<0.000000e+00> : vector<16x32xf32>
    %7 = tpu.matmul %1, %6, %cst {dimension_numbers = #tpu.dot_dimension_numbers<[1], [0], [0], [1], [0, 0, 1, 1], [], []>} : vector<16x4xf32>, vector<4x32xf32>, vector<16x32xf32> -> vector<16x32xf32>
    %c0_10 = arith.constant 0 : index
    %c0_11 = arith.constant 0 : index
    %8 = vector.load %arg4[%c0_10, %c0_11] : memref<1x32xf32, #tpu.memory_space<vmem>>, vector<1x32xf32>
    %9 = vector.broadcast %8 : vector<1x32xf32> to vector<16x32xf32>
    %10 = arith.addf %7, %9 : vector<16x32xf32>
    %11 = vector.shape_cast %10 : vector<16x32xf32> to vector<2x8x32xf32>
    %c0_12 = arith.constant 0 : index
    %c0_13 = arith.constant 0 : index
    %12 = vector.load %arg5[%c0_12, %c0_13] : memref<4x32xf32, #tpu.memory_space<vmem>>, vector<4x32xf32>
    %cst_14 = arith.constant dense<0.000000e+00> : vector<16x32xf32>
    %13 = tpu.matmul %5, %12, %cst_14 {dimension_numbers = #tpu.dot_dimension_numbers<[1], [0], [0], [1], [0, 0, 1, 1], [], []>} : vector<16x4xf32>, vector<4x32xf32>, vector<16x32xf32> -> vector<16x32xf32>
    %c0_15 = arith.constant 0 : index
    %c0_16 = arith.constant 0 : index
    %14 = vector.load %arg6[%c0_15, %c0_16] : memref<1x32xf32, #tpu.memory_space<vmem>>, vector<1x32xf32>
    %15 = vector.broadcast %14 : vector<1x32xf32> to vector<16x32xf32>
    %16 = arith.addf %13, %15 : vector<16x32xf32>
    %17 = vector.shape_cast %16 : vector<16x32xf32> to vector<2x8x32xf32>
    %c0_17 = arith.constant 0 : index
    %c0_18 = arith.constant 0 : index
    %18 = vector.load %arg7[%c0_17, %c0_18] : memref<4x32xf32, #tpu.memory_space<vmem>>, vector<4x32xf32>
    %cst_19 = arith.constant dense<0.000000e+00> : vector<16x32xf32>
    %19 = tpu.matmul %3, %18, %cst_19 {dimension_numbers = #tpu.dot_dimension_numbers<[1], [0], [0], [1], [0, 0, 1, 1], [], []>} : vector<16x4xf32>, vector<4x32xf32>, vector<16x32xf32> -> vector<16x32xf32>
    %c0_20 = arith.constant 0 : index
    %c0_21 = arith.constant 0 : index
    %20 = vector.load %arg8[%c0_20, %c0_21] : memref<1x32xf32, #tpu.memory_space<vmem>>, vector<1x32xf32>
    %21 = vector.broadcast %20 : vector<1x32xf32> to vector<16x32xf32>
    %22 = arith.addf %19, %21 : vector<16x32xf32>
    %23 = vector.shape_cast %22 : vector<16x32xf32> to vector<2x8x32xf32>
    %cst_22 = arith.constant dense<0.000000e+00> : vector<2x8x8xf32>
    %24 = tpu.matmul %11, %17, %cst_22 {dimension_numbers = #tpu.dot_dimension_numbers<[2], [2], [1], [1], [0, 0, 0, 1, 1, 1], [0], [0]>} : vector<2x8x32xf32>, vector<2x8x32xf32>, vector<2x8x8xf32> -> vector<2x8x8xf32>
    %cst_23 = arith.constant 0.176776692 : f32
    %25 = vector.broadcast %cst_23 : f32 to vector<2x8x8xf32>
    %26 = arith.mulf %24, %25 : vector<2x8x8xf32>
    %cst_24 = arith.constant dense<0xFF800000> : vector<2x8xf32>
    %27 = vector.multi_reduction <maximumf>, %26, %cst_24 [2] : vector<2x8x8xf32> to vector<2x8xf32>
    %28 = vector.shape_cast %27 : vector<2x8xf32> to vector<2x8x1xf32>
    %29 = vector.broadcast %28 : vector<2x8x1xf32> to vector<2x8x8xf32>
    %30 = arith.subf %26, %29 : vector<2x8x8xf32>
    %31 = math.exp %30 : vector<2x8x8xf32>
    %cst_25 = arith.constant dense<0.000000e+00> : vector<2x8xf32>
    %32 = vector.multi_reduction <add>, %31, %cst_25 [2] : vector<2x8x8xf32> to vector<2x8xf32>
    %33 = vector.shape_cast %32 : vector<2x8xf32> to vector<2x8x1xf32>
    %34 = tpu.reciprocal %33 {approx = true} : vector<2x8x1xf32> -> vector<2x8x1xf32>
    %35 = vector.broadcast %34 : vector<2x8x1xf32> to vector<2x8x8xf32>
    %36 = arith.mulf %31, %35 : vector<2x8x8xf32>
    %cst_26 = arith.constant dense<0.000000e+00> : vector<2x8x32xf32>
    %37 = tpu.matmul %36, %23, %cst_26 {dimension_numbers = #tpu.dot_dimension_numbers<[1], [1], [2], [2], [0, 0, 0, 2, 1, 2], [0], [0]>} : vector<2x8x8xf32>, vector<2x8x32xf32>, vector<2x8x32xf32> -> vector<2x8x32xf32>
    %38 = vector.shape_cast %37 : vector<2x8x32xf32> to vector<16x32xf32>
    %c0_27 = arith.constant 0 : index
    %c0_28 = arith.constant 0 : index
    %39 = vector.load %arg9[%c0_27, %c0_28] : memref<32x4xf32, #tpu.memory_space<vmem>>, vector<32x4xf32>
    %cst_29 = arith.constant dense<0.000000e+00> : vector<16x4xf32>
    %40 = tpu.matmul %38, %39, %cst_29 {dimension_numbers = #tpu.dot_dimension_numbers<[1], [0], [0], [1], [0, 0, 1, 1], [], []>} : vector<16x32xf32>, vector<32x4xf32>, vector<16x4xf32> -> vector<16x4xf32>
    %c0_30 = arith.constant 0 : index
    %c0_31 = arith.constant 0 : index
    %41 = vector.load %arg10[%c0_30, %c0_31] : memref<1x4xf32, #tpu.memory_space<vmem>>, vector<1x4xf32>
    %42 = vector.broadcast %41 : vector<1x4xf32> to vector<16x4xf32>
    %43 = arith.addf %40, %42 : vector<16x4xf32>
    %c0_32 = arith.constant 0 : index
    %c0_33 = arith.constant 0 : index
    %44 = vector.load %arg11[%c0_32, %c0_33] : memref<16x4xf32, #tpu.memory_space<vmem>>, vector<16x4xf32>
    tpu.vector_store %arg11[%c0_32, %c0_33], %43 {strides = array<i32>} : memref<16x4xf32, #tpu.memory_space<vmem>>, vector<16x4xf32>,
    return
  }
}

</mosaic_0001>

<bundles_post_ra>
// kernel: tpu_custom_call.1
= control target key start
LH: loop header
LB: loop body
LE: loop exit
PB: predicated region body
PF: predicated region fallthrough
CT: control target
= control target key end

     0   :  { %vm59_vm0 = vcmask 1043456   ;;  %vm52_vm1 = vcmask 31744   ;;  %v908_v9 = vmov 0.0   ;;  %vm909_vm2 = vmmov 0   ;;  %s1057_s5 = inlined_call_operand.vmem [shape: f32[4,32], index: 5, kind: input, shape index: {}]   ;;  %s1058_s2 = inlined_call_operand.vmem [shape: f32[2,8,4], index: 2, kind: input, shape index: {}]   ;;  %s1059_s3 = inlined_call_operand.vmem [shape: f32[4,32], index: 3, kind: input, shape index: {}]   ;;  %s1060_s0 = inlined_call_operand.vmem [shape: f32[2,8,4], index: 0, kind: input, shape index: {}]   ;;  %s1061_s7 = inlined_call_operand.vmem [shape: f32[4,32], index: 7, kind: input, shape index: {}]   ;;  %s1062_s1 = inlined_call_operand.vmem [shape: f32[2,8,4], index: 1, kind: input, shape index: {}]   ;;  %s1063_s6 = inlined_call_operand.vmem [shape: f32[1,32], index: 6, kind: input, shape index: {}]   ;;  %s1064_s4 = inlined_call_operand.vmem [shape: f32[1,32], index: 4, kind: input, shape index: {}]   ;;  %s1065_s8 = inlined_call_operand.vmem [shape: f32[1,32], index: 8, kind: input, shape index: {}]   ;;  %s1066_s9 = inlined_call_operand.vmem [shape: f32[32,4], index: 9, kind: input, shape index: {}]   ;;  %s1067_s10 = inlined_call_operand.vmem [shape: f32[1,4], index: 10, kind: input, shape index: {}]   ;;  %s1068_s11 = inlined_call_operand.vmem [shape: f32[16,4], index: 11, kind: output, shape index: {}]  }
   0x1   :  { %v138_v0 = vld [vmem:[%s1057_s5] sm:$0xf]  ;;  %v43_v2 = vld [vmem:[%s1058_s2 + $0x8] sm:$0xff]  ;;  %vm322_vm3 = vcmask 261120   ;;  %vm477_vm4 = vcmask 64512   ;;  %v713_v49 = vld [vmem:[%s1066_s9 + $0x18] sm:$0xff] }
   0x2   :  { %v42_v1 = vld [vmem:[%s1058_s2] sm:$0xff]  ;;  %857 = vmatprep.subr.msk.mxu1 %vm59_vm0, %v138_v0  ;;  %v39_v5 = vld [vmem:[%s1060_s0 + $0x8] sm:$0xff]  ;;  %v712_v51 = vld [vmem:[%s1066_s9 + $0x10] sm:$0xff] }
   0x3   :  { %859 = vmatprep.mubr.msk.f32.mxu1 %vm52_vm1, %v42_v1  ;;  %v44_v3 = vld [vmem:[%s1059_s3] sm:$0xf]  ;;  %858 = vmatpush3.msk.msra.mxu1 %vm59_vm0, %v138_v0  ;;  %v41_v8 = vld [vmem:[%s1062_s1 + $0x8] sm:$0xff] }
   0x4   :  { %v38_v4 = vld [vmem:[%s1060_s0] sm:$0xff]  ;;  %852 = vmatprep.subr.msk.mxu0 %vm59_vm0, %v44_v3  ;;  %860 = vmatmul.mubr.msk.f32.vlgmr.msra.gmra.mxu1 %vm52_vm1, %v43_v2  ;;  %v711_v52 = vld [vmem:[%s1066_s9 + $0x8] sm:$0xff] }
   0x5   :  { %853 = vmatpush3.msk.msra.mxu0 %vm59_vm0, %v44_v3  ;;  %854 = vmatprep.mubr.msk.f32.mxu0 %vm52_vm1, %v38_v4  ;;  %v230_v6 = vld [vmem:[%s1061_s7] sm:$0xf] }
   0x6   :  { %855 = vmatmul.mubr.msk.f32.vlgmr.msra.gmra.mxu0 %vm52_vm1, %v39_v5  ;;  %862 = vmatprep.subr.msk.mxu0 %vm59_vm0, %v230_v6  ;;  %v40_v7 = vld [vmem:[%s1062_s1] sm:$0xff] }
   0x7   :  { %863 = vmatpush3.msk.msra.mxu0 %vm59_vm0, %v230_v6  ;;  %864 = vmatprep.mubr.msk.f32.mxu0 %vm52_vm1, %v40_v7  ;;  %v812_v10 = vld [vmem:[%s1063_s6] ss:$0 sm:$0xff] }
   0x8   :  { %872 = vmatprep.subr.mxu0 %v908_v9  ;;  %867 = vmatprep.subr.mxu1 %v908_v9  ;;  %v808_v12 = vld [vmem:[%s1064_s4] ss:$0 sm:$0xff] }
   0x9   :  { %869 = vmatprep.mubr.msk.f32.mxu1 %vm909_vm2, %v908_v9  ;;  %v816_v20 = vld [vmem:[%s1065_s8] ss:$0 sm:$0xff] }
   0xa   :  { %865 = vmatmul.mubr.msk.f32.vlgmr.msra.gmra.mxu0 %vm52_vm1, %v41_v8  ;;  %v710_v54 = vld [vmem:[%s1066_s9] sm:$0xff] }
   0xb   :  { %874 = vmatprep.mubr.msk.f32.mxu0 %vm909_vm2, %v908_v9  ;;  %v826_v59 = vld [vmem:[%s1067_s10] ss:$0 sm:$0xff] }
  0xc4   :  { %v861_v11 = vpop.f32.mrf.mxu1 }
  0xc5   :  { %v227_v13 = vadd.f32 %v861_v11, %v812_v10 }
  0xc6   :  { %v856_v14 = vpop.f32.mrf.mxu0  ;;  %v221_v15 = vpop.f32.mrf.mxu1 }
  0xc7   :  { %v135_v16 = vadd.f32 %v856_v14, %v808_v12  ;;  %v222_v17 = vadd.f32 %v812_v10, %v221_v15  ;;  %873 = vmatpush3.xpose.msk.msra.mxu0 %vm322_vm3, %v227_v13 }
  0xc8   :  { %v129_v18 = vpop.f32.mrf.mxu0  ;;  %882 = vmatprep.subr.mxu0 %v908_v9 }
  0xc9   :  { %868 = vmatpush3.xpose.msk.msra.mxu1 %vm322_vm3, %v222_v17  ;;  %v130_v19 = vadd.f32 %v808_v12, %v129_v18 }
  0xca   :  { %875 = vmatmul.mubr.msk.f32.vlgmr.msra.gmra.mxu0 %vm322_vm3, %v135_v16  ;;  %877 = vmatprep.subr.mxu1 %v908_v9  ;;  %v866_v21 = vpop.f32.mrf.mxu0 }
  0xcb   :  { %884 = vmatprep.mubr.msk.f32.mxu0 %vm909_vm2, %v908_v9  ;;  %v319_v22 = vadd.f32 %v866_v21, %v816_v20 }
  0xcc   :  { %870 = vmatmul.mubr.msk.f32.vlgmr.msra.gmra.mxu1 %vm322_vm3, %v130_v19  ;;  %v313_v23 = vpop.f32.mrf.mxu0 }
  0xcd   :  { %879 = vmatprep.mubr.msk.f32.mxu1 %vm909_vm2, %v908_v9  ;;  %v314_v24 = vadd.f32 %v816_v20, %v313_v23  ;;  %883 = vmatpush3.msra.mxu0 %v319_v22 }
  0xcf   :  { %878 = vmatpush3.msra.mxu1 %v314_v24 }
  0xd0   :  { %887 = vmatprep.subr.mxu1 %v713_v49 }
 0x18a   :  { %v471_v25 = vpop.f32.mrf.mxu0 }
 0x18b   :  { %v476_v30 = vmul.f32 0.17677669, %v471_v25 }
 0x18c   :  { %v395_v26 = vpop.f32.mrf.mxu1  ;;  %v876_v27 = vpop.f32.mrf.mxu0 }
 0x18d   :  { %v475_v28 = vmul.f32 0.17677669, %v395_v26  ;;  %v481_v32 = vsel %vm477_vm4, %v476_v30, -inf }
 0x18e   :  { %v871_v29 = vpop.f32.mrf.mxu1 }
 0x18f   :  { %v478_v31 = vsel %vm477_vm4, %v475_v28, -inf }
 0x190   :  { %479 = vmax.xlane.f32.xlu0 %v478_v31 }
 0x194   :  { %482 = vmax.xlane.f32.xlu0 %v481_v32 }
 0x219   :  { %v480_v33 = vpop.xlane.xlu0 %479 }
 0x21a   :  { %v484_v34 = vsub.f32 %v475_v28, %v480_v33 }
 0x21c   :  { %v486_v35 = vmul.f32 1.442695, %v484_v34 }
 0x21d   :  { %v483_v36 = vpop.xlane.xlu0 %482 }
 0x21e   :  { %900 = vpow2.f32 %v486_v35  ;;  %v485_v37 = vsub.f32 %v476_v30, %v483_v36 }
 0x220   :  { %v488_v38 = vmul.f32 1.442695, %v485_v37 }
 0x222   :  { %902 = vpow2.f32 %v488_v38 }
 0x22b   :  { %v901_v39 = vpop.eup %900 }
 0x22c   :  { %v490_v40 = vsel %vm477_vm4, %v901_v39, 0.0 }
 0x22d   :  { %491 = vadd.xlane.f32.xlu1 %v490_v40 }
 0x22f   :  { %v903_v41 = vpop.eup %902 }
 0x230   :  { %v493_v42 = vsel %vm477_vm4, %v903_v41, 0.0 }
 0x231   :  { %494 = vadd.xlane.f32.xlu1 %v493_v42 }
 0x2b6   :  { %v492_v43 = vpop.xlane.xlu1 %491 }
 0x2b7   :  { %904 = vrcp.f32 %v492_v43 }
 0x2ba   :  { %v495_v44 = vpop.xlane.xlu1 %494 }
 0x2bb   :  { %906 = vrcp.f32 %v495_v44 }
 0x2c4   :  { %v905_v45 = vpop.eup %904 }
 0x2c5   :  { %v498_v46 = vmul.f32 %v905_v45, %v901_v39 }
 0x2c7   :  { %500 = vxpose.xlu0.b32.start.end [1/1] (short) (narrow) %v498_v46, 8 }
 0x2c8   :  { %v907_v47 = vpop.eup %906 }
 0x2c9   :  { %v499_v48 = vmul.f32 %v907_v47, %v903_v41 }
 0x2cb   :  { %605 = vxpose.xlu1.b32.start.end [1/1] (short) (narrow) %v499_v48, 8 }
 0x343   :  { %v516_v50 = vpop.trf.xlu0 }
 0x344   :  { %880 = vmatmul.mubr.msk.f32.vlgmr.msra.gmra.mxu1 %vm477_vm4, %v516_v50 }
 0x345   :  { %888 = vmatpush3.msra.mxu1 %v713_v49 }
 0x346   :  { %889 = vmatprep.subr.mxu1 %v712_v51 }
 0x347   :  { %v621_v53 = vpop.trf.xlu1  ;;  %890 = vmatpush3.msra.mxu1 %v712_v51 }
 0x348   :  { %885 = vmatmul.mubr.msk.f32.vlgmr.msra.gmra.mxu0 %vm477_vm4, %v621_v53  ;;  %891 = vmatprep.subr.mxu1 %v711_v52 }
 0x349   :  { %892 = vmatpush3.msra.mxu1 %v711_v52 }
 0x34a   :  { %893 = vmatprep.subr.mxu1 %v710_v54 }
 0x34b   :  { %894 = vmatpush3.msra.mxu1 %v710_v54 }
 0x404   :  { %v601_v55 = vpop.f32.mrf.mxu1 }
 0x405   :  { %895 = vmatprep.mubr.msk.f32.mxu1 %vm322_vm3, %v601_v55 }
 0x406   :  { %v881_v56 = vpop.f32.mrf.mxu1 }
 0x408   :  { %v706_v57 = vpop.f32.mrf.mxu0 }
 0x409   :  { %896 = vmatmul.mubr.msk.f32.vlgmr.msra.gmra.mxu1 %vm322_vm3, %v706_v57 }
 0x40a   :  { %v886_v58 = vpop.f32.mrf.mxu0 }
 0x4c9   :  { %v897_v60 = vpop.f32.mrf.mxu1 }
 0x4ca   :  { %v799_v61 = vadd.f32 %v897_v60, %v826_v59 }
 0x4cb   :  { %v793_v62 = vpop.f32.mrf.mxu1 }
 0x4cc   :  { %803 = vst.msk [vmem:[%s1068_s11 + $0x8] sm:$0xff] %vm52_vm1, %v799_v61  ;;  %v794_v63 = vadd.f32 %v826_v59, %v793_v62 }
 0x4ce   :  { %802 = vst.msk [vmem:[%s1068_s11] sm:$0xff] %vm52_vm1, %v794_v63 }

</bundles_post_ra>
